<compile_context>
chip_gen: v7x
topology: tpu7x:2x2x1
jax: 0.10.0
libtpu: 0.0.40
codegen_flags: <defaults>
</compile_context>

<pallas_src>
import functools

import jax
import jax.numpy as jnp
from jax.experimental import pallas as pl
from jax.experimental.pallas import tpu as pltpu

_LANE = 128
_MiB = 1024 * 1024


def _residual_linear_kernel(x_ref, w_ref, b_ref, o_ref, *, precision):
    # out = x @ W + b + x   (fn = Linear, then residual add); f32 accumulation,
    # bias + residual added in f32, single downcast to the output dtype.
    x = x_ref[...]
    y = jnp.dot(x, w_ref[...], preferred_element_type=jnp.float32,
                precision=precision)
    o_ref[...] = (y
                  + b_ref[...].astype(jnp.float32)
                  + x.astype(jnp.float32)).astype(o_ref.dtype)


def _vmem_capacity_bytes():
    """Physical per-core VMEM; conservative v7x fallback if the query fails."""
    try:
        cap = getattr(pltpu.get_tpu_info(), "vmem_capacity_bytes", None)
        if cap:
            return int(cap)
    except Exception:
        pass
    return 64 * _MiB


def _sublane_granule(itemsize):
    # f32 -> 8 rows, bf16 -> 16 rows, int8 -> 32 rows (packed-sublane tiling).
    return 8 * max(1, 4 // itemsize)


def _choose_tm(M, H, itemsize, budget):
    """Largest row tile such that the (conservatively double-buffered) resident
    weight + bias plus double-buffered x and out tiles fit the VMEM budget.
    Prefer >= 4 grid steps (2 per v7x core under megacore sharding), then >= 2."""
    Hl = max(_LANE, ((H + _LANE - 1) // _LANE) * _LANE)   # lane-padded footprint
    granule = _sublane_granule(itemsize)
    resident = 2 * (Hl * Hl + Hl) * itemsize              # W + b, 2 buffers (conservative)

    if resident > budget:
        # TODO(synk): N-split path (grid axis over output columns) for very large H.
        raise NotImplementedError(
            "hidden dim too large to keep the weight resident in VMEM; "
            "column-split path not implemented")

    def fits(tm):
        return resident + 4 * tm * Hl * itemsize <= budget  # 2 x-bufs + 2 out-bufs

    candidates = (4096, 2048, 1024, 512, 256, 128, 64, 32, 16, 8)
    for min_steps in (4, 2):
        for tm in candidates:
            if tm % granule != 0:
                continue
            if tm * min_steps > M:
                continue
            if fits(tm):
                return tm
    return M                                               # tiny M: single full block


def residual_linear(x, w, b, *, compute_dtype=None):
    """x: (B, S, H); w: (H, H); b: (H,).  Returns fn(x) + x (PyTorch Residual).
    compute_dtype=jnp.bfloat16 streams x/W/out in bf16 (f32 accumulation inside)."""
    B, S, H = x.shape
    M = B * S

    if compute_dtype is not None:
        x = x.astype(compute_dtype)
        w = w.astype(compute_dtype)
        b = b.astype(compute_dtype)
    dtype = x.dtype
    itemsize = jnp.dtype(dtype).itemsize

    x2 = x.reshape(M, H)            # natural width: no pad, no extra HBM passes
    b2 = b.reshape(1, H)

    cap = _vmem_capacity_bytes()
    budget = min(int(cap * 0.85), cap - 16 * _MiB)          # ~48 MiB v7x, ~108 MiB v5e/v6e
    vmem_limit = min(cap - 4 * _MiB, budget + 8 * _MiB)

    tm = _choose_tm(M, H, itemsize, budget)
    grid = (pl.cdiv(M, tm),)

    # f32 inputs: HIGHEST so the MXU doesn't silently drop to bf16-reduced passes.
    precision = (jax.lax.Precision.HIGHEST if dtype == jnp.float32
                 else jax.lax.Precision.DEFAULT)

    out = pl.pallas_call(
        functools.partial(_residual_linear_kernel, precision=precision),
        out_shape=jax.ShapeDtypeStruct((M, H), dtype),
        grid_spec=pltpu.PrefetchScalarGridSpec(
            num_scalar_prefetch=0,
            grid=grid,
            in_specs=[
                pl.BlockSpec((tm, H), lambda i: (i, 0)),   # x row tile (pipelined)
                pl.BlockSpec((H, H), lambda i: (0, 0)),    # weight: constant index -> resident
                pl.BlockSpec((1, H), lambda i: (0, 0)),    # bias: resident
            ],
            out_specs=pl.BlockSpec((tm, H), lambda i: (i, 0)),
        ),
        compiler_params=pltpu.CompilerParams(
            # Rows are independent -> megacore sharding on v7x; neutral on v5e/v6e.
            dimension_semantics=("parallel",),
            vmem_limit_bytes=int(vmem_limit),
        ),
    )(x2, w2 if (w2 := w) is not None else w, b2)

    return out.reshape(B, S, H)


if __name__ == "__main__":
    key = jax.random.PRNGKey(0)
    kx, kw, kb = jax.random.split(key, 3)

    B, S, H = 2, 8, 32
    x = jax.random.normal(kx, (B, S, H), dtype=jnp.float32)
    # deterministic "fn" parameters (Linear H -> H)
    w = jax.random.normal(kw, (H, H), dtype=jnp.float32) * 0.05
    b = jax.random.normal(kb, (H,), dtype=jnp.float32) * 0.05

    # reference in plain JAX (f32, highest precision): Residual.forward == fn(x) + x
    ref = jnp.einsum("bsh,hk->bsk", x, w,
                     precision=jax.lax.Precision.HIGHEST) + b + x

    # f32 path
    out = residual_linear(x, w, b)
    jax.block_until_ready(out)
    assert jnp.allclose(out, ref, atol=1e-5, rtol=1e-5), "f32 mismatch vs reference"

    # bf16 streaming path (half the HBM bytes; f32 accumulation inside the kernel)
    out_bf16 = residual_linear(x, w, b, compute_dtype=jnp.bfloat16)
    jax.block_until_ready(out_bf16)
    assert jnp.allclose(out_bf16.astype(jnp.float32), ref, atol=5e-2, rtol=5e-2), \
        "bf16 mismatch vs reference"

    print("KERNEL_OK")
</pallas_src>

<mosaic_0001>
module attributes {stable_mosaic.version = 11 : i64} {
  func.func @_residual_linear_kernel(%arg0: i32, %arg1: memref<8x32xf32, #tpu.memory_space<vmem>>, %arg2: memref<32x32xf32, #tpu.memory_space<vmem>>, %arg3: memref<1x32xf32, #tpu.memory_space<vmem>>, %arg4: memref<8x32xf32, #tpu.memory_space<vmem>>) attributes {dimension_semantics = [#tpu.dimension_semantics<parallel>], iteration_bounds = array<i64: 2>, scalar_prefetch = 0 : i64, scratch_operands = 0 : i64, tpu.core_type = #tpu.core_type<tc>, window_params = [{transform_indices = @transform_0, window_bounds = array<i64: 8, 32>}, {pipeline_mode = #tpu.pipeline_mode<synchronous>, transform_indices = @transform_1, window_bounds = array<i64: 32, 32>}, {pipeline_mode = #tpu.pipeline_mode<synchronous>, transform_indices = @transform_2, window_bounds = array<i64: 1, 32>}, {transform_indices = @transform_3, window_bounds = array<i64: 8, 32>}]} {
    %c0 = arith.constant 0 : index
    %c0_0 = arith.constant 0 : index
    %0 = vector.load %arg1[%c0, %c0_0] : memref<8x32xf32, #tpu.memory_space<vmem>>, vector<8x32xf32>
    %c0_1 = arith.constant 0 : index
    %c0_2 = arith.constant 0 : index
    %1 = vector.load %arg2[%c0_1, %c0_2] : memref<32x32xf32, #tpu.memory_space<vmem>>, vector<32x32xf32>
    %cst = arith.constant dense<0.000000e+00> : vector<8x32xf32>
    %2 = tpu.matmul %0, %1, %cst {dimension_numbers = #tpu.dot_dimension_numbers<[1], [0], [0], [1], [0, 0, 1, 1], [], []>, precision = #tpu.contract_precision<fp32>} : vector<8x32xf32>, vector<32x32xf32>, vector<8x32xf32> -> vector<8x32xf32>
    %c0_3 = arith.constant 0 : index
    %c0_4 = arith.constant 0 : index
    %3 = vector.load %arg3[%c0_3, %c0_4] : memref<1x32xf32, #tpu.memory_space<vmem>>, vector<1x32xf32>
    %4 = vector.broadcast %3 : vector<1x32xf32> to vector<8x32xf32>
    %5 = arith.addf %2, %4 : vector<8x32xf32>
    %6 = arith.addf %5, %0 : vector<8x32xf32>
    %c0_5 = arith.constant 0 : index
    %c0_6 = arith.constant 0 : index
    %7 = vector.load %arg4[%c0_5, %c0_6] : memref<8x32xf32, #tpu.memory_space<vmem>>, vector<8x32xf32>
    tpu.vector_store %arg4[%c0_5, %c0_6], %6 {strides = array<i32>} : memref<8x32xf32, #tpu.memory_space<vmem>>, vector<8x32xf32>,
    return
  }
  func.func @transform_0(%arg0: i32) -> (i32, i32) {
    %c0_i32 = arith.constant 0 : i32
    %c0_i32_0 = arith.constant 0 : i32
    return %arg0, %c0_i32 : i32, i32
  }
  func.func @transform_1(%arg0: i32) -> (i32, i32) {
    %c0_i32 = arith.constant 0 : i32
    %c0_i32_0 = arith.constant 0 : i32
    %c0_i32_1 = arith.constant 0 : i32
    return %c0_i32, %c0_i32_0 : i32, i32
  }
  func.func @transform_2(%arg0: i32) -> (i32, i32) {
    %c0_i32 = arith.constant 0 : i32
    %c0_i32_0 = arith.constant 0 : i32
    %c0_i32_1 = arith.constant 0 : i32
    return %c0_i32, %c0_i32_0 : i32, i32
  }
  func.func @transform_3(%arg0: i32) -> (i32, i32) {
    %c0_i32 = arith.constant 0 : i32
    %c0_i32_0 = arith.constant 0 : i32
    return %arg0, %c0_i32 : i32, i32
  }
}

</mosaic_0001>

<bundles_post_ra>
// kernel: tpu_custom_call.1
= control target key start
LH: loop header
LB: loop body
LE: loop exit
PB: predicated region body
PF: predicated region fallthrough
CT: control target
= control target key end

     0   :  { %8 = vsyncpa [#allocation3], 0  ;;  %s1398_s0 = inlined_call_operand.hbm [shape: f32[16,32], index: 0, kind: input, shape index: {}]   ;;  %s1399_s1 = inlined_call_operand.hbm [shape: f32[32,32], index: 1, kind: input, shape index: {}]   ;;  %s1400_s2 = inlined_call_operand.vmem [shape: f32[1,32], index: 2, kind: input, shape index: {}]   ;;  %s1401_s3 = inlined_call_operand.hbm [shape: f32[16,32], index: 3, kind: output, shape index: {}]  }
   0x1   :  { %10 = vsyncpa [#allocation3 + $0x1], 0 }
   0x2   :  { %11 = vsyncpa [#allocation6], 0 }
   0x3   :  { %12 = vsyncpa [#allocation4], 0 }
   0x4   :  { %14 = vsyncpa [#allocation4 + $0x1], 0  ;;  %s1165_s12 = smov 0   ;;  %s1167_s13 = smov 0  }
   0x5   :  { %s1169_s14 = smov 0   ;;  %s1171_s15 = smov 0  }
   0x6 LB: > { %s1186_s16 = sadd.s32 4294967295, %s1135_s15   ;;  %s798_s17 = sadd.s32 4294967294, %s1135_s15   ;;  %s1135_s15 = sphi %s1171_s15, %s1421_s15   ;;  %s1131_s14 = sphi %s1169_s14, %s1420_s14   ;;  %s1127_s13 = sphi %s1167_s13, %s1419_s13   ;;  %s1123_s12 = sphi %s1165_s12, %s1418_s12  }
   0x7   : > { %p40_p0 = scmp.ne.s32.totalorder %s1127_s13, %s1123_s12  ;;  %p1402_p1 = scmp.eq.s32.totalorder %s1186_s16, 0 }
   0x8   : > { %p112_p3 = scmp.eq.s32.totalorder %s798_s17, 1  ;;  %p799_p5 = scmp.ge.s32.totalorder %s1135_s15, 1 }
   0x9   : > { %p1195_p4 = por %p1402_p1, %p40_p0  ;;  %p119_p7 = scmp.lt.s32.totalorder %s1135_s15, 3 }
   0xa   : > { %p1200_p6 = por %p112_p3, %p40_p0  ;;  %s1137_s21 = smov [#allocation5]  }
   0xb   : > { %s1405_s18 = scalar_select %p1195_p4, 1, 0 }
   0xc   : > { %s1406_s19 = scalar_select %p1200_p6, 1, 0 }
   0xd   : > { %p1205_p8 = pnand %p799_p5, %p119_p7  ;;  %s131_s22 = sshll.u32 %s1137_s21, 4  ;;  %s1209_s22 = int_to_ptr.vmem [resolvable:$true] %s131_s22 }
   0xe   : > { %s1221_s24 = sadd.s32 1, %s1135_s15   ;;  %s27_s25 = sadd.s32 1, %s1131_s14 }
   0xf   : > { %s1407_s20 = scalar_select %p1205_p8, 1, 0 }
  0x10   : > { %p953_p9 = pneg %p1205_p8  ;;  %s24_s26 = ssub.s32 %s1135_s15, %s1221_s24 }
  0x11   : > { %s1007_s29 = scalar_lea.hbm %s1399_s1, 512 }
  0x12   : > { %p1216_p11 = pnand %p953_p9, %p1402_p1  ;;  %p1008_p12 = scmp.ne.s32.totalorder %s1399_s1, %s1007_s29 }
  0x13   : > { %p1014_p5 = scmp.lt.u32.totalorder %s1007_s29, %s1399_s1 }
  0x14   : > { %p1009_p13 = pneg %p1216_p11 }
  0x16   : > { %p1010_p0 = pnand %p1009_p13, %p1008_p12 }
  0x18   : > { %p1011_p3 = pneg %p1010_p0 }
  0x1a   : > { %p1016_p7 = pnand %p1014_p5, %p1011_p3 }
  0x1c   : > { %1019 = shalt.err (!%p1016_p7)
}
  0x1d   : > { %s1020_s7 = scalar_lea.vmem %s1209_s22, 512  ;;  %p1028_p2 = scmp.lt.s32.totalorder %s1209_s22, %s1209_s22 }
  0x1e   : > { %p1021_p9 = scmp.ne.s32.totalorder %s1209_s22, %s1020_s7  ;;  %p1029_p6 = scmp.lt.s32.totalorder %s1020_s7, %s1020_s7 }
  0x20   : > { %p1023_p10 = pnand %p1021_p9, %p1009_p13  ;;  %p1030_p4 = por %p1029_p6, %p1028_p2 }
  0x22   : > { %p1024_p1 = pneg %p1023_p10 }
  0x24   : > { %p1031_p8 = pnand %p1030_p4, %p1024_p1 }
  0x26   : > { %1034 = shalt.err (!%p1031_p8)
}
  0x27   : > { %s1138_s8 = smov 128   ;;  %s1139_s9 = smov 8  }
  0x28   : > { %956 = dma.hbm_to_vmem [thread:$0]  (!%p1216_p11), %s1399_s1, 512, %s1209_s22, [#allocation6], %s1138_s8, %s1138_s8, %s1139_s9  }
  0x29   : > { %p25_p2 = scmp.eq.s32.totalorder %s24_s26, 0  ;;  %p34_p1 = scmp.ne.s32.totalorder %s1131_s14, %s1127_s13 }
  0x2a   : > { %p35_p4 = scmp.eq.s32.totalorder %s1135_s15, 0  ;;  %p966_p6 = scmp.lt.s32.totalorder %s1135_s15, 2 }
  0x2b   : > { %s1252_s17 = scalar_select %p25_p2, %s1131_s14, %s27_s25  }
  0x2c   : > { %p36_p8 = por %p35_p4, %p34_p1  ;;  %p1409_p10 = scmp.eq.s32.totalorder %s1186_s16, 1 }
  0x2d   : > { %s148_s27 = sand.u32 1, %s1131_s14   ;;  %s803_s28 = sshll.u32 %s1135_s15, 7 }
  0x2e   : > { %p1256_p12 = por %p1409_p10, %p34_p1  ;;  %s802_s29 = sshll.u32 %s148_s27, 3 }
  0x2f   : > { %s1265_s4 = scalar_lea.hbm %s1398_s0, %s803_s28  ;;  %s152_s22 = scalar_lea.vmem [#allocation2], %s802_s29 }
  0x30   : > { %s159_s25 = sshll.u32 %s152_s22, 4  ;;  %p1267_p11 = pnand %p966_p6, %p36_p8  ;;  %s1271_s25 = int_to_ptr.vmem [resolvable:$true] %s159_s25 }
  0x31   : > { %s149_s5 = scalar_lea.sflag [#allocation3], %s148_s27  ;;  %s1035_s6 = scalar_lea.hbm %s1265_s4, 128 }
  0x32   : > { %p1036_p13 = scmp.ne.s32.totalorder %s1265_s4, %s1035_s6  ;;  %p1037_p0 = pneg %p1267_p11 }
  0x33   : > { %s1040_s9 = scalar_lea.hbm %s1398_s0, 256  ;;  %p1041_p7 = scmp.lt.u32.totalorder %s1265_s4, %s1398_s0 }
  0x34   : > { %p1038_p3 = pnand %p1037_p0, %p1036_p13  ;;  %p1042_p9 = scmp.lt.u32.totalorder %s1040_s9, %s1035_s6 }
  0x35   : > { %p1044_p1 = scmp.lt.u32.totalorder %s1035_s6, %s1265_s4 }
  0x36   : > { %p1039_p5 = pneg %p1038_p3  ;;  %p1043_p2 = por %p1042_p9, %p1041_p7 }
  0x38   : > { %p1045_p4 = por %p1044_p1, %p1043_p2 }
  0x3a   : > { %p1046_p6 = pnand %p1045_p4, %p1039_p5 }
  0x3c   : > { %1049 = shalt.err (!%p1046_p6)
}
  0x3d   : > { %s1050_s27 = scalar_lea.vmem %s1271_s25, 128  ;;  %s1140_s28 = smov [#allocation2]  }
  0x3e   : > { %p1051_p8 = scmp.ne.s32.totalorder %s1271_s25, %s1050_s27  ;;  %s1055_s29 = sshll.u32 %s1140_s28, 4  ;;  %s1056_s29 = int_to_ptr.vmem [resolvable:$false] %s1055_s29 }
  0x3f   : > { %s1057_s23 = scalar_lea.vmem %s1056_s29, 256  ;;  %p1058_p3 = scmp.lt.s32.totalorder %s1271_s25, %s1056_s29 }
  0x40   : > { %p1053_p10 = pnand %p1051_p8, %p1037_p0  ;;  %p1059_p7 = scmp.lt.s32.totalorder %s1057_s23, %s1050_s27 }
  0x42   : > { %p1054_p13 = pneg %p1053_p10  ;;  %p1060_p9 = por %p1059_p7, %p1058_p3 }
  0x44   : > { %p1061_p2 = pnand %p1060_p9, %p1054_p13 }
  0x46   : > { %1064 = shalt.err (!%p1061_p2)
}
  0x47   : > { %960 = dma.hbm_to_vmem [thread:$0]  (!%p1267_p11), %s1265_s4, 128, %s1271_s25, %s149_s5  }
  0x48   : > { %p1412_p5 = scmp.ne.s32.totalorder %s1407_s20, 0 }
  0x49   : > { %s1301_s30 = sand.u32 (!%p1412_p5), 1, %s1127_s13   ;;  %p1413_p0 = scmp.ne.s32.totalorder (!%p1412_p5), %s1405_s18, 0 }
  0x4a   : > { %168 = sbr.rel (%p1412_p5) target bundleno = 351 (0x15f), region = 32  ;;  %s805_s22 = sshll.u32 (!%p1412_p5), %s1301_s30, 3 }
  0x4b   : > { %s171_s6 = scalar_lea.sflag (!%p1412_p5), [#allocation3], %s1301_s30  ;;  %s174_s7 = scalar_lea.vmem (!%p1412_p5), [#allocation2], %s805_s22 }
  0x51   : > { %1110 = dma.done.wait (%p1413_p0), %s171_s6, 128  }
  0x52   : > { %1112 = vsyncadd (%p1413_p0), %s171_s6, 4294967168  ;;  %p1414_p11 = scmp.eq.s32.totalorder %s1186_s16, 0 }
  0x54   : > { %1114 = dma.done.wait (%p1414_p11), [#allocation6], 512   ;;  %p1415_p1 = pmov %p1414_p11 }
  0x55   : > { %v1141_v0 = vmov 0.0|0.0   ;;  %vm1142_vm0 = vmmov 0   ;;  %v1143_v1 = vmov 0.0   ;;  %vm213_vm1 = vcmask 261120   ;;  %v202_v2 = vld [vmem:[#allocation5] sm:$0xff]  ;;  %v203_v3 = vld [vmem:[#allocation5 + $0x8] sm:$0xff] }
  0x56   : > { %1116 = vsyncadd (%p1415_p1), [#allocation6], 4294966784  ;;  %909 = vmatprep.subr.bf16.mxu0 %v1141_v0  ;;  %915 = vmatprep.subr.bf16.mxu1 %v1141_v0  ;;  %v204_v4 = vld [vmem:[#allocation5 + $0x10] sm:$0xff]  ;;  %v218_v5 = vand.u32 4294901760, %v202_v2  ;;  %v221_v6 = vand.u32 4294901760, %v203_v3  ;;  %v205_v7 = vld [vmem:[#allocation5 + $0x18] sm:$0xff] }
  0x57   : > { %851 = vmatprep.mubr.msk.f32.mxu0 %vm1142_vm0, %v1143_v1  ;;  %862 = vmatprep.mubr.msk.f32.mxu1 %vm1142_vm0, %v1143_v1  ;;  %v224_v8 = vand.u32 4294901760, %v204_v4  ;;  %v1321_v9 = vld [vmem:[%s174_s7] sm:$0xff]  ;;  %v227_v10 = vand.u32 4294901760, %v205_v7  ;;  %s810_s4 = sshll.u32 %s1186_s16, 7  ;;  %s200_s25 = scalar_lea.vmem [#allocation7], %s805_s22 }
  0x58   : > { %v215_v11 = vsel %vm213_vm1, %v1321_v9, 0  ;;  %v910_v12 = vpack.c.bf16 %v221_v6, %v218_v5  ;;  %v298_v13 = vsub.f32 %v202_v2, %v218_v5  ;;  %v305_v14 = vsub.f32 %v203_v3, %v221_v6  ;;  %v808_v41 = vld [vmem:[%s1400_s2] ss:$0 sm:$0xff]  ;;  %s718_s26 = sshll.u32 %s200_s25, 4  ;;  %s1353_s9 = scalar_lea.hbm %s1401_s3, %s810_s4  ;;  %s1355_s26 = int_to_ptr.vmem [resolvable:$true] %s718_s26 }
  0x59   : > { %v312_v15 = vsub.f32 %v204_v4, %v224_v8  ;;  %v319_v16 = vsub.f32 %v205_v7, %v227_v10  ;;  %v286_v17 = vand.u32 4294901760, %v215_v11  ;;  %v913_v18 = vpack.c.bf16 %v227_v10, %v224_v8  ;;  %s705_s16 = scalar_lea.sflag [#allocation4], %s1301_s30  ;;  %s1065_s10 = scalar_lea.vmem %s1355_s26, 128 }
  0x5a   : > { %911 = vmatpush3.bf16.msra.mxu0 %v910_v12  ;;  %v299_v19 = vand.u32 4294901760, %v298_v13  ;;  %v306_v20 = vand.u32 4294901760, %v305_v14  ;;  %v922_v35 = vpack.c.bf16 %v305_v14, %v298_v13  ;;  %p1066_p4 = scmp.ne.s32.totalorder %s1355_s26, %s1065_s10  ;;  %s1144_s11 = smov [#allocation7]  }
  0x5b   : > { %v313_v21 = vand.u32 4294901760, %v312_v15  ;;  %912 = vmatprep.subr.bf16.mxu0 %v1141_v0  ;;  %v287_v22 = vsub.f32 %v215_v11, %v286_v17  ;;  %v320_v23 = vand.u32 4294901760, %v319_v16  ;;  %v925_v38 = vpack.c.bf16 %v319_v16, %v312_v15  ;;  %s1069_s27 = sshll.u32 %s1144_s11, 4  ;;  %s1070_s27 = int_to_ptr.vmem [resolvable:$false] %s1069_s27 }
  0x5c   : > { %v300_v24 = vsub.f32 %v298_v13, %v299_v19  ;;  %v307_v25 = vsub.f32 %v305_v14, %v306_v20  ;;  %v934_v39 = vpack.c.bf16 %v306_v20, %v299_v19  ;;  %p1067_p6 = pnand %p1066_p4, %p1256_p12  ;;  %s1071_s28 = scalar_lea.vmem %s1070_s27, 256 }
  0x5d   : > { %v314_v26 = vsub.f32 %v312_v15, %v313_v21  ;;  %v288_v27 = vand.u32 4294901760, %v287_v22  ;;  %v321_v28 = vsub.f32 %v319_v16, %v320_v23  ;;  %v937_v40 = vpack.c.bf16 %v320_v23, %v313_v21  ;;  %p1072_p10 = scmp.lt.s32.totalorder %s1355_s26, %s1070_s27  ;;  %p1073_p13 = scmp.lt.s32.totalorder %s1071_s28, %s1065_s10 }
  0x5e   : > { %914 = vmatpush3.bf16.msra.mxu0 %v913_v18  ;;  %v301_v29 = vand.u32 4294901760, %v300_v24  ;;  %v308_v30 = vand.u32 4294901760, %v307_v25  ;;  %p1068_p8 = pneg %p1067_p6 }
  0x5f   : > { %v315_v31 = vand.u32 4294901760, %v314_v26  ;;  %921 = vmatprep.subr.bf16.mxu0 %v1141_v0  ;;  %v289_v32 = vsub.f32 %v287_v22, %v288_v27  ;;  %v322_v33 = vand.u32 4294901760, %v321_v28  ;;  %p1074_p3 = por %p1073_p13, %p1072_p10 }
  0x60   : > { %v916_v34 = vpack.c.bf16 %v308_v30, %v301_v29 }
  0x61   : > { %v290_v36 = vand.u32 4294901760, %v289_v32  ;;  %v919_v37 = vpack.c.bf16 %v322_v33, %v315_v31  ;;  %p1075_p7 = pnand %p1074_p3, %p1068_p8 }
  0x62   : > { %917 = vmatpush3.bf16.msra.mxu1 %v916_v34 }
  0x63   : > { %852 = vmatmul.mubr.f32.vlgmr.msra.gmra.mrb[0].mxu0 %v290_v36  ;;  %918 = vmatprep.subr.bf16.mxu1 %v1141_v0 }
  0x64   : > { %923 = vmatpush3.bf16.msra.mxu0 %v922_v35  ;;  %873 = vmatprep.mubr.msk.f32.mxu0 %vm1142_vm0, %v1143_v1 }
  0x65   : > { %924 = vmatprep.subr.bf16.mxu0 %v1141_v0 }
  0x66   : > { %920 = vmatpush3.bf16.msra.mxu1 %v919_v37 }
  0x67   : > { %927 = vmatprep.subr.bf16.mxu1 %v1141_v0 }
  0x68   : > { %926 = vmatpush3.bf16.msra.mxu0 %v925_v38 }
  0x69   : > { %863 = vmatmul.mubr.f32.vlgmr.msra.gmra.mrb[0].mxu1 %v286_v17  ;;  %933 = vmatprep.subr.bf16.mxu0 %v1141_v0 }
  0x6a   : > { %929 = vmatpush3.bf16.msra.mxu1 %v910_v12  ;;  %884 = vmatprep.mubr.msk.f32.mxu1 %vm1142_vm0, %v1143_v1 }
  0x6b   : > { %874 = vmatmul.mubr.f32.vlgmr.msra.gmra.mrb[2].mxu0 %v287_v22  ;;  %930 = vmatprep.subr.bf16.mxu1 %v1141_v0 }
  0x6c   : > { %935 = vmatpush3.bf16.msra.mxu0 %v934_v39  ;;  %895 = vmatprep.mubr.msk.f32.mxu0 %vm1142_vm0, %v1143_v1 }
  0x6d   : > { %936 = vmatprep.subr.bf16.mxu0 %v1141_v0 }
  0x6e   : > { %932 = vmatpush3.bf16.msra.mxu1 %v913_v18 }
  0x6f   : > { %939 = vmatprep.subr.bf16.mxu1 %v1141_v0 }
  0x70   : > { %938 = vmatpush3.bf16.msra.mxu0 %v937_v40 }
  0x71   : > { %885 = vmatmul.mubr.f32.vlgmr.msra.gmra.mrb[2].mxu1 %v288_v27 }
  0x72   : > { %941 = vmatpush3.bf16.msra.mxu1 %v910_v12  ;;  %906 = vmatprep.mubr.msk.f32.mxu1 %vm1142_vm0, %v1143_v1 }
  0x73   : > { %896 = vmatmul.mubr.f32.vlgmr.msra.gmra.mrb[4].mxu0 %v286_v17  ;;  %942 = vmatprep.subr.bf16.mxu1 %v1141_v0 }
  0x76   : > { %944 = vmatpush3.bf16.msra.mxu1 %v913_v18 }
  0x79   : > { %907 = vmatmul.mubr.f32.vlgmr.msra.gmra.mrb[4].mxu1 %v286_v17 }
 0x136   : > { %v292_v42 = vpop.f32.mrb[0].mxu0 }
 0x137   : > { %v853_v43 = vpop.f32.mrb[1].mxu0  ;;  %v293_v44 = vadd.f32 %v808_v41, %v292_v42 }
 0x13c   : > { %v383_v45 = vpop.f32.mrb[0].mxu1 }
 0x13d   : > { %v384_v46 = vadd.f32 %v383_v45, %v293_v44  ;;  %v864_v47 = vpop.f32.mrb[1].mxu1 }
 0x13e   : > { %v463_v48 = vpop.f32.mrb[2].mxu0 }
 0x13f   : > { %v464_v49 = vadd.f32 %v463_v48, %v384_v46  ;;  %v875_v50 = vpop.f32.mrb[3].mxu0 }
 0x144   : > { %v540_v51 = vpop.f32.mrb[2].mxu1 }
 0x145   : > { %v541_v52 = vadd.f32 %v540_v51, %v464_v49  ;;  %v886_v53 = vpop.f32.mrb[3].mxu1 }
 0x146   : > { %v623_v54 = vpop.f32.mrb[4].mxu0 }
 0x147   : > { %v624_v55 = vadd.f32 %v623_v54, %v541_v52  ;;  %v897_v56 = vpop.f32.mrb[5].mxu0 }
 0x14c   : > { %v698_v57 = vpop.f32.mrb[4].mxu1 }
 0x14d   : > { %v699_v58 = vadd.f32 %v698_v57, %v624_v55  ;;  %v908_v59 = vpop.f32.mrb[5].mxu1 }
 0x14f   : > { %v702_v60 = vadd.f32 %v699_v58, %v1321_v9 }
 0x151   : > { %703 = vst.msk [vmem:[%s200_s25] sm:$0xff] %vm213_vm1, %v702_v60 }
 0x152   : > { %1078 = shalt.err (!%p1075_p7)
}
 0x153   : > { %s1079_s29 = scalar_lea.hbm %s1353_s9, 128  ;;  %s1083_s22 = scalar_lea.hbm %s1401_s3, 256 }
 0x154   : > { %p1080_p9 = scmp.ne.s32.totalorder %s1353_s9, %s1079_s29  ;;  %p1084_p0 = scmp.lt.u32.totalorder %s1353_s9, %s1401_s3 }
 0x155   : > { %p1085_p11 = scmp.lt.u32.totalorder %s1083_s22, %s1079_s29  ;;  %p1087_p4 = scmp.lt.u32.totalorder %s1079_s29, %s1353_s9 }
 0x156   : > { %p1081_p2 = pnand %p1080_p9, %p1256_p12 }
 0x157   : > { %p1086_p1 = por %p1085_p11, %p1084_p0 }
 0x158   : > { %p1082_p5 = pneg %p1081_p2 }
 0x159   : > { %p1088_p6 = por %p1087_p4, %p1086_p1 }
 0x15b   : > { %p1089_p8 = pnand %p1088_p6, %p1082_p5 }
 0x15d   : > { %1092 = shalt.err (!%p1089_p8)
}
 0x15e   : > { %951 = dma.vmem_to_hbm [thread:$0]  (%p1256_p12), %s1355_s26, 128, %s1353_s9, %s705_s16  }
 0x15f PF: > { %s730_s18 = sand.u32 1, %s1123_s12   ;;  %p1416_p10 = scmp.ne.s32.totalorder %s1406_s19, 0 }
 0x160   : > { %p1417_p13 = scmp.ge.s32.totalorder %s1135_s15, 2  ;;  %s731_s20 = scalar_lea.sflag [#allocation4], %s730_s18 }
 0x162   : > { %p962_p3 = pnand %p1417_p13, %p1416_p10 }
 0x164   : > { %1118 = dma.done.wait (!%p962_p3), %s731_s20, 128  }
 0x165   : > { %1120 = vsyncadd (!%p962_p3), %s731_s20, 4294967168  ;;  %p17_p7 = scmp.ge.s32.totalorder %s1221_s24, 4   ;;  %s1418_s12 = smov %s1127_s13 }
 0x166   : > { %s1419_s13 = smov %s1131_s14  ;;  %s1420_s14 = smov %s1252_s17 }
 0x167   : > { %s1421_s15 = smov %s1221_s24  ;;  %19 = sbr.rel (!%p17_p7) target bundleno = 6 (0x6), region = 81 }
 0x16e   :  { %736 = vsyncpa [#allocation3], 1 }
 0x16f   :  { %738 = vsyncpa [#allocation3 + $0x1], 1 }
 0x170   :  { %739 = vsyncpa [#allocation6], 1 }
 0x171   :  { %740 = vsyncpa [#allocation4], 1 }
 0x172   :  { %742 = vsyncpa [#allocation4 + $0x1], 1 }

</bundles_post_ra>
